<compile_context>
chip_gen: v7x
topology: tpu7x:2x2x1
jax: 0.10.0
libtpu: 0.0.40
codegen_flags: <defaults>
</compile_context>

<pallas_src>
import functools

import jax
import jax.numpy as jnp
import numpy as np
from jax.experimental import pallas as pl
from jax.experimental.pallas import tpu as pltpu


def rnn_fused_kernel(tok_ref, proj_ref, whh_ref, wfc_ref, bfc_ref, out_ref,
                     *, batch, seq_len):
    """tok_ref: (T*B_pad, 1) int32 time-major token ids; out_ref: (B_pad, V_pad) f32 logits."""
    TB = seq_len * batch
    V, H = proj_ref.shape

    # --- fused embedding gather + input projection + bias: one-hot (T*B, V) @ proj_table (V, H) ---
    # The 0/1 selection is exact, so the single bf16 matmul (f32 accumulate) directly yields the
    # (already bias-folded) per-timestep input projection for every row. One MXU pass, no recast.
    tok = tok_ref[...]                                             # (T*B_pad, 1) int32
    lane = jax.lax.broadcasted_iota(jnp.int32, (TB, V), 1)
    onehot = (lane == tok).astype(jnp.bfloat16)
    x_proj = jnp.dot(onehot, proj_ref[...],
                     preferred_element_type=jnp.float32)           # (T*B_pad, H) f32

    # --- recurrence: h stays in vregs, all-f32 (no per-step cast), one MXU matmul per step ---
    h = jnp.zeros((batch, H), jnp.float32)
    for t in range(seq_len):                                       # T is static -> full unroll
        x_t = x_proj[t * batch:(t + 1) * batch, :]                 # time-major => one-vreg slice
        h = jnp.tanh(x_t + jnp.dot(h, whh_ref[...],
                                   preferred_element_type=jnp.float32))

    # --- fc on the last hidden state only; (8, V_pad) lane-dense unmasked store ---
    out_ref[...] = (jnp.dot(h, wfc_ref[...], preferred_element_type=jnp.float32)
                    + bfc_ref[...])


def rnn_model_forward(tokens, params):
    """tokens: (B, T) int32 character indices -> (B, num_chars) float32 logits."""
    H = params["w_ih"].shape[0]
    V = params["w_fc"].shape[1]
    V_pad = ((V + 127) // 128) * 128                  # lane-dense FC output slab

    # Fused projection table, built in f32 and cast to bf16 once (exact-selection matmul in-kernel).
    proj_table = (params["emb"].astype(jnp.float32) @ params["w_ih"].astype(jnp.float32)
                  + (params["b_ih"] + params["b_hh"]).astype(jnp.float32)
                  ).astype(jnp.bfloat16)                                    # (V, H)

    w_hh = params["w_hh"].astype(jnp.float32)                               # (H, H), f32 recurrence
    w_fc = jnp.pad(params["w_fc"].astype(jnp.float32), ((0, 0), (0, V_pad - V)))
    b_fc = jnp.pad(params["b_fc"].astype(jnp.float32), (0, V_pad - V)).reshape(1, V_pad)

    B, T = tokens.shape
    B_pad = ((B + 7) // 8) * 8                        # sublane-granular batch
    tokens_p = jnp.pad(tokens.astype(jnp.int32), ((0, B_pad - B), (0, 0)))
    # time-major flat token ids so each timestep's rows are one contiguous (B_pad, H) slice
    tok_tm = tokens_p.T.reshape(T * B_pad, 1)

    kernel = functools.partial(rnn_fused_kernel, batch=B_pad, seq_len=T)

    # Single program: no grid, no dimension_semantics (trivial grid would only add overhead here).
    # TODO(synk): if B grows (>=16 rows/core), add a leading "parallel" batch grid axis for v7x's
    #             2 TensorCores; if V/H grow to realistic sizes, tile the FC over V_pad blocks and
    #             replace the one-hot gather with a scalar-prefetch/DMA row gather (v7x 64 MiB VMEM).
    out = pl.pallas_call(
        kernel,
        out_shape=jax.ShapeDtypeStruct((B_pad, V_pad), jnp.float32),
        in_specs=[
            pl.BlockSpec(memory_space=pltpu.MemorySpace.VMEM),   # token ids (tiny)
            pl.BlockSpec(memory_space=pltpu.MemorySpace.VMEM),   # proj_table = emb @ W_ih + b
            pl.BlockSpec(memory_space=pltpu.MemorySpace.VMEM),   # W_hh (f32)
            pl.BlockSpec(memory_space=pltpu.MemorySpace.VMEM),   # W_fc (lane-padded, f32)
            pl.BlockSpec(memory_space=pltpu.MemorySpace.VMEM),   # b_fc (lane-padded, f32)
        ],
        out_specs=pl.BlockSpec(memory_space=pltpu.MemorySpace.VMEM),
    )(tok_tm, proj_table, w_hh, w_fc, b_fc)
    return out[:B, :V]


def reference_forward(tokens, params):
    """Pure-JAX f32 reference replicating the torch semantics (for a self-check)."""
    x = jnp.take(params["emb"], tokens, axis=0).astype(jnp.float32)
    B, T, H = x.shape
    h = jnp.zeros((B, H), jnp.float32)
    for t in range(T):
        h = jnp.tanh(x[:, t, :] @ params["w_ih"] + params["b_ih"]
                     + h @ params["w_hh"] + params["b_hh"])
    return h @ params["w_fc"] + params["b_fc"]


def init_params(key, num_chars, hidden_size):
    k_emb, k_wih, k_whh, k_bih, k_bhh, k_wfc, k_bfc = jax.random.split(key, 7)
    # nn.Embedding: N(0, 1); nn.RNN / nn.Linear: U(-1/sqrt(H), 1/sqrt(H))
    s = 1.0 / np.sqrt(hidden_size)
    return {
        "emb": jax.random.normal(k_emb, (num_chars, hidden_size), jnp.float32),
        "w_ih": jax.random.uniform(k_wih, (hidden_size, hidden_size), jnp.float32, -s, s),
        "w_hh": jax.random.uniform(k_whh, (hidden_size, hidden_size), jnp.float32, -s, s),
        "b_ih": jax.random.uniform(k_bih, (hidden_size,), jnp.float32, -s, s),
        "b_hh": jax.random.uniform(k_bhh, (hidden_size,), jnp.float32, -s, s),
        "w_fc": jax.random.uniform(k_wfc, (hidden_size, num_chars), jnp.float32, -s, s),
        "b_fc": jax.random.uniform(k_bfc, (num_chars,), jnp.float32, -s, s),
    }


if __name__ == "__main__":
    num_chars = 40
    hidden_size = 32
    batch = 2
    seq_len = 8

    key = jax.random.PRNGKey(0)
    k_params, k_tok = jax.random.split(key)
    params = init_params(k_params, num_chars, hidden_size)
    tokens = jax.random.randint(k_tok, (batch, seq_len), 0, num_chars, dtype=jnp.int32)

    logits = rnn_model_forward(tokens, params)
    logits = jax.block_until_ready(logits)

    ref = reference_forward(tokens, params)
    # Only the fused emb@W_ih(+bias) table is bf16-rounded (recurrence and FC are pure f32),
    # so the result tracks the f32 reference closely; keep a modest tolerance.
    if not np.allclose(np.asarray(logits), np.asarray(ref), rtol=2e-2, atol=2e-2):
        raise AssertionError("Pallas kernel output mismatch vs reference")

    print("KERNEL_OK")
</pallas_src>

<mosaic_0001>
module attributes {stable_mosaic.version = 11 : i64} {
  func.func @rnn_fused_kernel(%arg0: memref<64x1xi32, #tpu.memory_space<vmem>>, %arg1: memref<40x32xbf16, #tpu.memory_space<vmem>>, %arg2: memref<32x32xf32, #tpu.memory_space<vmem>>, %arg3: memref<32x128xf32, #tpu.memory_space<vmem>>, %arg4: memref<1x128xf32, #tpu.memory_space<vmem>>, %arg5: memref<8x128xf32, #tpu.memory_space<vmem>>) attributes {dimension_semantics = [], scalar_prefetch = 0 : i64, scratch_operands = 0 : i64, tpu.core_type = #tpu.core_type<tc>} {
    %c0 = arith.constant 0 : index
    %c0_0 = arith.constant 0 : index
    %0 = vector.load %arg0[%c0, %c0_0] : memref<64x1xi32, #tpu.memory_space<vmem>>, vector<64x1xi32>
    %1 = tpu.iota {dimensions = array<i32: 1>} : vector<64x40xi32>
    %2 = vector.broadcast %0 : vector<64x1xi32> to vector<64x40xi32>
    %3 = arith.cmpi eq, %1, %2 : vector<64x40xi32>
    %4 = arith.extui %3 : vector<64x40xi1> to vector<64x40xi32>
    %5 = arith.sitofp %4 : vector<64x40xi32> to vector<64x40xf32>
    %6 = arith.truncf %5 : vector<64x40xf32> to vector<64x40xbf16>
    %c0_1 = arith.constant 0 : index
    %c0_2 = arith.constant 0 : index
    %7 = vector.load %arg1[%c0_1, %c0_2] : memref<40x32xbf16, #tpu.memory_space<vmem>>, vector<40x32xbf16>
    %cst = arith.constant dense<0.000000e+00> : vector<64x32xf32>
    %8 = tpu.matmul %6, %7, %cst {dimension_numbers = #tpu.dot_dimension_numbers<[1], [0], [0], [1], [0, 0, 1, 1], [], []>} : vector<64x40xbf16>, vector<40x32xbf16>, vector<64x32xf32> -> vector<64x32xf32>
    %cst_3 = arith.constant 0.000000e+00 : f32
    %9 = vector.broadcast %cst_3 : f32 to vector<8x32xf32>
    %10 = vector.extract_strided_slice %8 {offsets = [0, 0], sizes = [8, 32], strides = [1, 1]} : vector<64x32xf32> to vector<8x32xf32>
    %c0_4 = arith.constant 0 : index
    %c0_5 = arith.constant 0 : index
    %11 = vector.load %arg2[%c0_4, %c0_5] : memref<32x32xf32, #tpu.memory_space<vmem>>, vector<32x32xf32>
    %cst_6 = arith.constant dense<0.000000e+00> : vector<8x32xf32>
    %12 = tpu.matmul %9, %11, %cst_6 {dimension_numbers = #tpu.dot_dimension_numbers<[1], [0], [0], [1], [0, 0, 1, 1], [], []>} : vector<8x32xf32>, vector<32x32xf32>, vector<8x32xf32> -> vector<8x32xf32>
    %13 = arith.addf %10, %12 : vector<8x32xf32>
    %14 = math.tanh %13 : vector<8x32xf32>
    %15 = vector.extract_strided_slice %8 {offsets = [8, 0], sizes = [8, 32], strides = [1, 1]} : vector<64x32xf32> to vector<8x32xf32>
    %c0_7 = arith.constant 0 : index
    %c0_8 = arith.constant 0 : index
    %16 = vector.load %arg2[%c0_7, %c0_8] : memref<32x32xf32, #tpu.memory_space<vmem>>, vector<32x32xf32>
    %cst_9 = arith.constant dense<0.000000e+00> : vector<8x32xf32>
    %17 = tpu.matmul %14, %16, %cst_9 {dimension_numbers = #tpu.dot_dimension_numbers<[1], [0], [0], [1], [0, 0, 1, 1], [], []>} : vector<8x32xf32>, vector<32x32xf32>, vector<8x32xf32> -> vector<8x32xf32>
    %18 = arith.addf %15, %17 : vector<8x32xf32>
    %19 = math.tanh %18 : vector<8x32xf32>
    %20 = vector.extract_strided_slice %8 {offsets = [16, 0], sizes = [8, 32], strides = [1, 1]} : vector<64x32xf32> to vector<8x32xf32>
    %c0_10 = arith.constant 0 : index
    %c0_11 = arith.constant 0 : index
    %21 = vector.load %arg2[%c0_10, %c0_11] : memref<32x32xf32, #tpu.memory_space<vmem>>, vector<32x32xf32>
    %cst_12 = arith.constant dense<0.000000e+00> : vector<8x32xf32>
    %22 = tpu.matmul %19, %21, %cst_12 {dimension_numbers = #tpu.dot_dimension_numbers<[1], [0], [0], [1], [0, 0, 1, 1], [], []>} : vector<8x32xf32>, vector<32x32xf32>, vector<8x32xf32> -> vector<8x32xf32>
    %23 = arith.addf %20, %22 : vector<8x32xf32>
    %24 = math.tanh %23 : vector<8x32xf32>
    %25 = vector.extract_strided_slice %8 {offsets = [24, 0], sizes = [8, 32], strides = [1, 1]} : vector<64x32xf32> to vector<8x32xf32>
    %c0_13 = arith.constant 0 : index
    %c0_14 = arith.constant 0 : index
    %26 = vector.load %arg2[%c0_13, %c0_14] : memref<32x32xf32, #tpu.memory_space<vmem>>, vector<32x32xf32>
    %cst_15 = arith.constant dense<0.000000e+00> : vector<8x32xf32>
    %27 = tpu.matmul %24, %26, %cst_15 {dimension_numbers = #tpu.dot_dimension_numbers<[1], [0], [0], [1], [0, 0, 1, 1], [], []>} : vector<8x32xf32>, vector<32x32xf32>, vector<8x32xf32> -> vector<8x32xf32>
    %28 = arith.addf %25, %27 : vector<8x32xf32>
    %29 = math.tanh %28 : vector<8x32xf32>
    %30 = vector.extract_strided_slice %8 {offsets = [32, 0], sizes = [8, 32], strides = [1, 1]} : vector<64x32xf32> to vector<8x32xf32>
    %c0_16 = arith.constant 0 : index
    %c0_17 = arith.constant 0 : index
    %31 = vector.load %arg2[%c0_16, %c0_17] : memref<32x32xf32, #tpu.memory_space<vmem>>, vector<32x32xf32>
    %cst_18 = arith.constant dense<0.000000e+00> : vector<8x32xf32>
    %32 = tpu.matmul %29, %31, %cst_18 {dimension_numbers = #tpu.dot_dimension_numbers<[1], [0], [0], [1], [0, 0, 1, 1], [], []>} : vector<8x32xf32>, vector<32x32xf32>, vector<8x32xf32> -> vector<8x32xf32>
    %33 = arith.addf %30, %32 : vector<8x32xf32>
    %34 = math.tanh %33 : vector<8x32xf32>
    %35 = vector.extract_strided_slice %8 {offsets = [40, 0], sizes = [8, 32], strides = [1, 1]} : vector<64x32xf32> to vector<8x32xf32>
    %c0_19 = arith.constant 0 : index
    %c0_20 = arith.constant 0 : index
    %36 = vector.load %arg2[%c0_19, %c0_20] : memref<32x32xf32, #tpu.memory_space<vmem>>, vector<32x32xf32>
    %cst_21 = arith.constant dense<0.000000e+00> : vector<8x32xf32>
    %37 = tpu.matmul %34, %36, %cst_21 {dimension_numbers = #tpu.dot_dimension_numbers<[1], [0], [0], [1], [0, 0, 1, 1], [], []>} : vector<8x32xf32>, vector<32x32xf32>, vector<8x32xf32> -> vector<8x32xf32>
    %38 = arith.addf %35, %37 : vector<8x32xf32>
    %39 = math.tanh %38 : vector<8x32xf32>
    %40 = vector.extract_strided_slice %8 {offsets = [48, 0], sizes = [8, 32], strides = [1, 1]} : vector<64x32xf32> to vector<8x32xf32>
    %c0_22 = arith.constant 0 : index
    %c0_23 = arith.constant 0 : index
    %41 = vector.load %arg2[%c0_22, %c0_23] : memref<32x32xf32, #tpu.memory_space<vmem>>, vector<32x32xf32>
    %cst_24 = arith.constant dense<0.000000e+00> : vector<8x32xf32>
    %42 = tpu.matmul %39, %41, %cst_24 {dimension_numbers = #tpu.dot_dimension_numbers<[1], [0], [0], [1], [0, 0, 1, 1], [], []>} : vector<8x32xf32>, vector<32x32xf32>, vector<8x32xf32> -> vector<8x32xf32>
    %43 = arith.addf %40, %42 : vector<8x32xf32>
    %44 = math.tanh %43 : vector<8x32xf32>
    %45 = vector.extract_strided_slice %8 {offsets = [56, 0], sizes = [8, 32], strides = [1, 1]} : vector<64x32xf32> to vector<8x32xf32>
    %c0_25 = arith.constant 0 : index
    %c0_26 = arith.constant 0 : index
    %46 = vector.load %arg2[%c0_25, %c0_26] : memref<32x32xf32, #tpu.memory_space<vmem>>, vector<32x32xf32>
    %cst_27 = arith.constant dense<0.000000e+00> : vector<8x32xf32>
    %47 = tpu.matmul %44, %46, %cst_27 {dimension_numbers = #tpu.dot_dimension_numbers<[1], [0], [0], [1], [0, 0, 1, 1], [], []>} : vector<8x32xf32>, vector<32x32xf32>, vector<8x32xf32> -> vector<8x32xf32>
    %48 = arith.addf %45, %47 : vector<8x32xf32>
    %49 = math.tanh %48 : vector<8x32xf32>
    %c0_28 = arith.constant 0 : index
    %c0_29 = arith.constant 0 : index
    %50 = vector.load %arg3[%c0_28, %c0_29] : memref<32x128xf32, #tpu.memory_space<vmem>>, vector<32x128xf32>
    %cst_30 = arith.constant dense<0.000000e+00> : vector<8x128xf32>
    %51 = tpu.matmul %49, %50, %cst_30 {dimension_numbers = #tpu.dot_dimension_numbers<[1], [0], [0], [1], [0, 0, 1, 1], [], []>} : vector<8x32xf32>, vector<32x128xf32>, vector<8x128xf32> -> vector<8x128xf32>
    %c0_31 = arith.constant 0 : index
    %c0_32 = arith.constant 0 : index
    %52 = vector.load %arg4[%c0_31, %c0_32] : memref<1x128xf32, #tpu.memory_space<vmem>>, vector<1x128xf32>
    %53 = vector.broadcast %52 : vector<1x128xf32> to vector<8x128xf32>
    %54 = arith.addf %51, %53 : vector<8x128xf32>
    %c0_33 = arith.constant 0 : index
    %c0_34 = arith.constant 0 : index
    %55 = vector.load %arg5[%c0_33, %c0_34] : memref<8x128xf32, #tpu.memory_space<vmem>>, vector<8x128xf32>
    tpu.vector_store %arg5[%c0_33, %c0_34], %54 {strides = array<i32>} : memref<8x128xf32, #tpu.memory_space<vmem>>, vector<8x128xf32>,
    return
  }
}

</mosaic_0001>

<bundles_post_ra>
// kernel: tpu_custom_call.1
= control target key start
LH: loop header
LB: loop body
LE: loop exit
PB: predicated region body
PF: predicated region fallthrough
CT: control target
= control target key end

     0   :  { %v1184_v2 = vmov 0   ;;  %v1185_v6 = vmov 0.0|0.0   ;;  %s1374_s0 = inlined_call_operand.vmem [shape: s32[64,1], index: 0, kind: input, shape index: {}]   ;;  %s1375_s1 = inlined_call_operand.vmem [shape: bf16[40,32], index: 1, kind: input, shape index: {}]   ;;  %s1376_s2 = inlined_call_operand.vmem [shape: f32[32,32], index: 2, kind: input, shape index: {}]   ;;  %s1377_s3 = inlined_call_operand.vmem [shape: f32[32,128], index: 3, kind: input, shape index: {}]   ;;  %s1378_s4 = inlined_call_operand.vmem [shape: f32[1,128], index: 4, kind: input, shape index: {}]   ;;  %s1379_s5 = inlined_call_operand.hbm [shape: f32[8,128], index: 5, kind: output, shape index: {}]  }
   0x1   :  { %v24_v0 = vld [vmem:[%s1374_s0 + $0x10] sm:$0xff]  ;;  %v22_v1 = vld [vmem:[%s1374_s0] sm:$0xff]  ;;  %1140 = vset.pattern.permute.xlu1 %v1184_v2  ;;  %1139 = vset.pattern.permute.xlu0 %v1184_v2  ;;  %v25_v3 = vld [vmem:[%s1374_s0 + $0x18] sm:$0xff] }
   0x2   :  { %39 = vperm.xlu1 %1140, %v24_v0   ;;  %33 = vperm.xlu0 %1139, %v22_v1   ;;  %v23_v4 = vld [vmem:[%s1374_s0 + $0x8] sm:$0xff]  ;;  %v1141_v5 = vld [vmem:[%s1375_s1] sm:$0xff]   ;;  %v188_v11 = vld [vmem:[%s1376_s2 + $0x10] sm:$0xff] }
   0x3   :  { %1079 = vmatprep.subr.bf16.mxu1 %v1185_v6  ;;  %v1142_v7 = vld [vmem:[%s1375_s1 + $0x8] sm:$0xff]   ;;  %v186_v8 = vld [vmem:[%s1376_s2] sm:$0xff]  ;;  %966 = vmatprep.subr.bf16.mxu0 %v1141_v5  ;;  %v189_v12 = vld [vmem:[%s1376_s2 + $0x18] sm:$0xff] }
   0x4   :  { %v187_v9 = vld [vmem:[%s1376_s2 + $0x8] sm:$0xff] }
   0x5   :  { %v1244_v10 = vpack.c.bf16 %v187_v9, %v186_v8 }
   0x6   :  { %42 = vperm.xlu1 %1140, %v25_v3   ;;  %36 = vperm.xlu0 %1139, %v23_v4  }
   0x7   :  { %10 = vsyncpa [#allocation3], 0  ;;  %v27_v13 = vld [vmem:[%s1374_s0 + $0x28] sm:$0xff]  ;;  %v26_v14 = vld [vmem:[%s1374_s0 + $0x20] sm:$0xff]  ;;  %967 = vmatpush3.bf16.msra.mxu0 %v1141_v5  ;;  %1081 = vmatpush3.bf16.msra.mxu1 %v1244_v10  ;;  %v1262_v16 = vpack.c.bf16 %v189_v12, %v188_v11  ;;  %vm117_vm0 = vcmask 1043456   ;;  %vm1186_vm1 = vmmov 0   ;;  %v30_v21 = vlaneseq }
   0x8   :  { %968 = vmatprep.subr.bf16.mxu0 %v1142_v7  ;;  %v1143_v15 = vld [vmem:[%s1375_s1 + $0x10] ss:$0 sps:$4 sm:$0xff]   ;;  %1082 = vmatprep.subr.bf16.mxu1 %v1185_v6  ;;  %v29_v17 = vld [vmem:[%s1374_s0 + $0x38] sm:$0xff]  ;;  %v1187_v19 = vmov 0.0   ;;  %vm104_vm6 = vcmask 326656   ;;  %vm190_vm11 = vcmask 261120  }
   0x9   :  { %v28_v18 = vld [vmem:[%s1374_s0 + $0x30] sm:$0xff]  ;;  %988 = vmatprep.mubr.msk.f32.mxu1 %vm1186_vm1, %v1187_v19  ;;  %v119_v20 = vsel %vm117_vm0, %v1143_v15, 0  ;;  %v31_v22 = vand.u32 127, %v30_v21  ;;  %s1188_s30 = smov [#allocation2]  }
   0xa   :  { %48 = vperm.xlu1 %1140, %v27_v13   ;;  %45 = vperm.xlu0 %1139, %v26_v14   ;;  %s882_s6 = sshll.u32 %s1188_s30, 4  ;;  %s883_s6 = int_to_ptr.vmem [resolvable:$true] %s882_s6 }
   0xb   :  { %969 = vmatpush3.bf16.msra.mxu0 %v1142_v7  ;;  %1084 = vmatpush3.bf16.msra.mxu1 %v1262_v16  ;;  %p1165_p1 = scmp.lt.s32.totalorder %s883_s6, %s883_s6 }
   0xc   :  { %1133 = vmatprep.subr.msk.bf16.mxu0 %vm117_vm0, %v1143_v15  ;;  %1085 = vmatprep.subr.bf16.mxu1 %v1185_v6 }
   0xe   :  { %54 = vperm.xlu1 %1140, %v29_v17   ;;  %51 = vperm.xlu0 %1139, %v28_v18   ;;  %v792_v17 = vld [vmem:[%s1377_s3 + $0x8] sm:$0xff]  ;;  %v793_v18 = vld [vmem:[%s1377_s3 + $0x10] sm:$0xff] }
   0xf   :  { %971 = vmatpush3.bf16.msra.mxu0 %v119_v20  ;;  %989 = vmatmul.mubr.f32.vlgmr.msra.gmra.mrb[0].mxu1 %v1187_v19  ;;  %v794_v20 = vld [vmem:[%s1377_s3 + $0x18] sm:$0xff] }
  0x10   :  { %1087 = vmatpush3.bf16.msra.mxu1 %v1244_v10  ;;  %999 = vmatprep.mubr.msk.f32.mxu1 %vm1186_vm1, %v1187_v19  ;;  %v1131_v21 = vpack.c.bf16 %v794_v20, %v793_v18 }
  0x11   :  { %1088 = vmatprep.subr.bf16.mxu1 %v1185_v6  ;;  %1097 = vmatprep.subr.bf16.mxu0 %v1185_v6 }
  0x14   :  { %1090 = vmatpush3.bf16.msra.mxu1 %v1262_v16 }
  0x15   :  { %1091 = vmatprep.subr.bf16.mxu1 %v1185_v6 }
  0x81   :  { %v40_v23 = vpop.permute.xlu1 %39  ;;  %v34_v24 = vpop.permute.xlu0 %33 }
  0x82   :  { %vm58_vm2 = vcmp.eq.s32.totalorder %v31_v22, %v40_v23  ;;  %vm56_vm3 = vcmp.eq.s32.totalorder %v31_v22, %v34_v24 }
  0x83   :  { %v892_v27 = vsel %vm58_vm2, 1.0, %v1187_v19  ;;  %v890_v28 = vsel %vm56_vm3, 1.0, %v1187_v19 }
  0x85   :  { %v43_v25 = vpop.permute.xlu1 %42  ;;  %v37_v26 = vpop.permute.xlu0 %36 }
  0x86   :  { %vm59_vm4 = vcmp.eq.s32.totalorder %v31_v22, %v43_v25  ;;  %vm57_vm5 = vcmp.eq.s32.totalorder %v31_v22, %v37_v26  ;;  %v912_v26 = vld [vmem:[%s1378_s4] ss:$0 sm:$0xff] }
  0x87   :  { %v893_v29 = vsel %vm59_vm4, 1.0, %v1187_v19  ;;  %v891_v30 = vsel %vm57_vm5, 1.0, %v1187_v19 }
  0x88   :  { %v81_v31 = vpack.c.bf16 %v893_v29, %v892_v27  ;;  %v80_v32 = vpack.c.bf16 %v891_v30, %v890_v28 }
  0x89   :  { %v49_v33 = vpop.permute.xlu1 %48  ;;  %v46_v34 = vpop.permute.xlu0 %45 }
  0x8a   :  { %vm61_vm7 = vcmp.eq.s32.totalorder %v31_v22, %v49_v33  ;;  %vm60_vm8 = vcmp.eq.s32.totalorder %v31_v22, %v46_v34  ;;  %972 = vmatprep.mubr.msk.bf16.mxu0 %vm104_vm6, %v80_v32 }
  0x8b   :  { %v895_v35 = vsel %vm61_vm7, 1.0, %v1187_v19  ;;  %v894_v36 = vsel %vm60_vm8, 1.0, %v1187_v19  ;;  %973 = vmatmul.mubr.msk.bf16.vlgmr.msra.gmra.mrb[0].mxu0 %vm104_vm6, %v81_v31 }
  0x8c   :  { %v82_v37 = vpack.c.bf16 %v895_v35, %v894_v36  ;;  %1099 = vmatpush3.bf16.msra.mxu0 %v1244_v10 }
  0x8d   :  { %v55_v38 = vpop.permute.xlu1 %54  ;;  %v52_v39 = vpop.permute.xlu0 %51  ;;  %1100 = vmatprep.subr.bf16.mxu0 %v1185_v6 }
  0x8e   :  { %vm63_vm9 = vcmp.eq.s32.totalorder %v31_v22, %v55_v38  ;;  %vm62_vm10 = vcmp.eq.s32.totalorder %v31_v22, %v52_v39  ;;  %976 = vmatprep.mubr.msk.bf16.mxu0 %vm104_vm6, %v82_v37 }
  0x8f   :  { %v897_v40 = vsel %vm63_vm9, 1.0, %v1187_v19  ;;  %v896_v41 = vsel %vm62_vm10, 1.0, %v1187_v19 }
  0x90   :  { %v83_v42 = vpack.c.bf16 %v897_v40, %v896_v41  ;;  %1102 = vmatpush3.bf16.msra.mxu0 %v1262_v16 }
  0x91   :  { %1109 = vmatprep.subr.bf16.mxu0 %v1185_v6 }
  0x93   :  { %977 = vmatmul.mubr.msk.bf16.gmra.mrb[4].mxu0 %vm104_vm6, %v83_v42 }
  0x94   :  { %1021 = vmatprep.mubr.msk.f32.mxu0 %vm1186_vm1, %v1187_v19 }
  0xe2   :  { %v260_v43 = vpop.f32.mrb[0].mxu1 }
  0xe3   :  { %v990_v44 = vpop.f32.mrb[1].mxu1 }
 0x15e   :  { %v974_v45 = vpop.f32.mrb[0].mxu0 }
 0x15f   :  { %v155_v46 = vpop.f32.mrb[1].mxu0 }
 0x160   :  { %v264_v47 = vadd.f32 %v260_v43, %v155_v46  ;;  %v975_v48 = vpop.f32.mrb[2].mxu0 }
 0x161   :  { %v158_v49 = vpop.f32.mrb[3].mxu0 }
 0x162   :  { %1144 = vtanh.f32 %v264_v47 }
 0x166   :  { %v1301_v50 = vpop.f32.mrb[4].mxu0 }
 0x167   :  { %v171_v51 = vpop.f32.mrb[5].mxu0 }
 0x168   :  { %v1303_v52 = vpop.f32.mrb[6].mxu0 }
 0x169   :  { %v174_v53 = vpop.f32.mrb[7].mxu0 }
 0x16c   :  { %v1145_v54 = vpop.eup %1144 }
 0x16d   :  { %1000 = vmatmul.mubr.msk.f32.vlgmr.msra.gmra.mrb[2].mxu1 %vm190_vm11, %v1145_v54 }
 0x16e   :  { %1093 = vmatpush3.bf16.msra.mxu1 %v1244_v10  ;;  %1010 = vmatprep.mubr.msk.f32.mxu1 %vm1186_vm1, %v1187_v19 }
 0x16f   :  { %1094 = vmatprep.subr.bf16.mxu1 %v1185_v6 }
 0x172   :  { %1096 = vmatpush3.bf16.msra.mxu1 %v1262_v16 }
 0x173   :  { %1103 = vmatprep.subr.bf16.mxu1 %v1185_v6 }
 0x240   :  { %v335_v55 = vpop.f32.mrb[2].mxu1 }
 0x241   :  { %v339_v56 = vadd.f32 %v335_v55, %v158_v49  ;;  %v1001_v57 = vpop.f32.mrb[3].mxu1 }
 0x243   :  { %1146 = vtanh.f32 %v339_v56 }
 0x24d   :  { %v1147_v58 = vpop.eup %1146 }
 0x24e   :  { %1011 = vmatmul.mubr.msk.f32.vlgmr.msra.gmra.mrb[4].mxu1 %vm190_vm11, %v1147_v58 }
 0x24f   :  { %1105 = vmatpush3.bf16.msra.mxu1 %v1244_v10  ;;  %1032 = vmatprep.mubr.msk.f32.mxu1 %vm1186_vm1, %v1187_v19 }
 0x250   :  { %1106 = vmatprep.subr.bf16.mxu1 %v1185_v6 }
 0x253   :  { %1108 = vmatpush3.bf16.msra.mxu1 %v1262_v16 }
 0x254   :  { %1115 = vmatprep.subr.bf16.mxu1 %v1185_v6 }
 0x321   :  { %v410_v59 = vpop.f32.mrb[4].mxu1 }
 0x322   :  { %v414_v60 = vadd.f32 %v974_v45, %v410_v59  ;;  %v1012_v61 = vpop.f32.mrb[5].mxu1 }
 0x324   :  { %1148 = vtanh.f32 %v414_v60 }
 0x32e   :  { %v1149_v62 = vpop.eup %1148 }
 0x32f   :  { %1022 = vmatmul.mubr.msk.f32.vlgmr.msra.gmra.mrb[8].mxu0 %vm190_vm11, %v1149_v62 }
 0x330   :  { %1111 = vmatpush3.bf16.msra.mxu0 %v1244_v10  ;;  %1043 = vmatprep.mubr.msk.f32.mxu0 %vm1186_vm1, %v1187_v19 }
 0x331   :  { %1112 = vmatprep.subr.bf16.mxu0 %v1185_v6 }
 0x334   :  { %1114 = vmatpush3.bf16.msra.mxu0 %v1262_v16 }
 0x335   :  { %1121 = vmatprep.subr.bf16.mxu0 %v1185_v6 }
 0x402   :  { %v485_v63 = vpop.f32.mrb[8].mxu0 }
 0x403   :  { %v489_v0 = vadd.f32 %v975_v48, %v485_v63  ;;  %v1023_v1 = vpop.f32.mrb[9].mxu0 }
 0x405   :  { %1150 = vtanh.f32 %v489_v0 }
 0x40f   :  { %v1151_v2 = vpop.eup %1150 }
 0x410   :  { %1033 = vmatmul.mubr.msk.f32.vlgmr.msra.gmra.mrb[6].mxu1 %vm190_vm11, %v1151_v2 }
 0x411   :  { %1117 = vmatpush3.bf16.msra.mxu1 %v1244_v10  ;;  %1054 = vmatprep.mubr.msk.f32.mxu1 %vm1186_vm1, %v1187_v19 }
 0x412   :  { %1118 = vmatprep.subr.bf16.mxu1 %v1185_v6 }
 0x415   :  { %1120 = vmatpush3.bf16.msra.mxu1 %v1262_v16 }
 0x416   :  { %1127 = vmatprep.subr.bf16.mxu1 %v1185_v6 }
 0x4e3   :  { %v560_v3 = vpop.f32.mrb[6].mxu1 }
 0x4e4   :  { %v564_v4 = vadd.f32 %v560_v3, %v171_v51  ;;  %v1034_v5 = vpop.f32.mrb[7].mxu1 }
 0x4e6   :  { %1152 = vtanh.f32 %v564_v4 }
 0x4f0   :  { %v1153_v7 = vpop.eup %1152 }
 0x4f1   :  { %1044 = vmatmul.mubr.msk.f32.vlgmr.msra.gmra.mrb[10].mxu0 %vm190_vm11, %v1153_v7 }
 0x4f2   :  { %1123 = vmatpush3.bf16.msra.mxu0 %v1244_v10  ;;  %1065 = vmatprep.mubr.msk.f32.mxu0 %vm1186_vm1, %v1187_v19 }
 0x4f3   :  { %1124 = vmatprep.subr.bf16.mxu0 %v1185_v6 }
 0x4f6   :  { %1126 = vmatpush3.bf16.msra.mxu0 %v1262_v16  ;;  %v791_v16 = vld [vmem:[%s1377_s3] sm:$0xff]  ;;  %s1160_s3 = scalar_lea.vmem %s883_s6, 128 }
 0x4f7   :  { %p1161_p0 = scmp.ne.s32.totalorder %s883_s6, %s1160_s3  ;;  %p1166_p2 = scmp.lt.s32.totalorder %s1160_s3, %s1160_s3 }
 0x4f9   :  { %p1167_p3 = por %p1166_p2, %p1165_p1 }
 0x4fb   :  { %p1168_p4 = pnand %p1167_p3, %p1161_p0 }
 0x5c4   :  { %v635_v8 = vpop.f32.mrb[10].mxu0 }
 0x5c5   :  { %v639_v9 = vadd.f32 %v635_v8, %v174_v53  ;;  %v1045_v11 = vpop.f32.mrb[11].mxu0 }
 0x5c7   :  { %1154 = vtanh.f32 %v639_v9 }
 0x5d1   :  { %v1155_v12 = vpop.eup %1154 }
 0x5d2   :  { %1055 = vmatmul.mubr.msk.f32.vlgmr.msra.gmra.mrb[8].mxu1 %vm190_vm11, %v1155_v12 }
 0x5d3   :  { %1076 = vmatprep.mubr.msk.f32.mxu1 %vm1186_vm1, %v1187_v19  ;;  %v1128_v19 = vpack.c.bf16 %v792_v17, %v791_v16 }
 0x5d5   :  { %1129 = vmatpush3.bf16.msra.mxu1 %v1128_v19 }
 0x5d6   :  { %1130 = vmatprep.subr.bf16.mxu1 %v1185_v6 }
 0x5d9   :  { %1132 = vmatpush3.bf16.msra.mxu1 %v1131_v21 }
 0x6a5   :  { %v710_v13 = vpop.f32.mrb[8].mxu1 }
 0x6a6   :  { %v714_v10 = vadd.f32 %v1301_v50, %v710_v13  ;;  %v1056_v14 = vpop.f32.mrb[9].mxu1 }
 0x6a8   :  { %1156 = vtanh.f32 %v714_v10 }
 0x6b2   :  { %v1157_v15 = vpop.eup %1156 }
 0x6b3   :  { %1066 = vmatmul.mubr.msk.f32.vlgmr.msra.gmra.mrb[12].mxu0 %vm190_vm11, %v1157_v15 }
 0x786   :  { %v785_v22 = vpop.f32.mrb[12].mxu0 }
 0x787   :  { %v789_v23 = vadd.f32 %v1303_v52, %v785_v22  ;;  %v1067_v24 = vpop.f32.mrb[13].mxu0 }
 0x789   :  { %1158 = vtanh.f32 %v789_v23 }
 0x793   :  { %v1159_v25 = vpop.eup %1158 }
 0x794   :  { %1077 = vmatmul.mubr.msk.f32.vlgmr.msra.gmra.mrb[10].mxu1 %vm190_vm11, %v1159_v25 }
 0x867   :  { %v871_v27 = vpop.f32.mrb[10].mxu1 }
 0x868   :  { %v872_v28 = vadd.f32 %v912_v26, %v871_v27  ;;  %v1078_v29 = vpop.f32.mrb[11].mxu1 }
 0x86a   :  { %875 = vst [vmem:[#allocation2] sm:$0xff] %v872_v28 }
 0x86b   :  { %1171 = shalt.err (!%p1168_p4)
}
 0x86c   :  { %s1172_s9 = scalar_lea.hbm %s1379_s5, 128 }
 0x86d   :  { %p1173_p5 = scmp.ne.s32.totalorder %s1379_s5, %s1172_s9  ;;  %p1176_p6 = scmp.lt.u32.totalorder %s1172_s9, %s1379_s5 }
 0x86f   :  { %p1178_p7 = pnand %p1176_p6, %p1173_p5 }
 0x871   :  { %1181 = shalt.err (!%p1178_p7)
}
 0x872   :  { %885 = dma.vmem_to_hbm [thread:$0]  %s883_s6, 128, %s1379_s5, [#allocation3]  }
 0x873   :  { %1182 = dma.done.wait [#allocation3], 128  }
 0x874   :  { %1183 = vsyncadd [#allocation3], 4294967168 }
 0x875   :  { %889 = vsyncpa [#allocation3], 1 }

</bundles_post_ra>
